<compile_context>
chip_gen: v6e
topology: v6e:2x2x1
jax: 0.10.0
libtpu: 0.0.40
codegen_flags: <defaults>
</compile_context>

<pallas_src>
import functools

import jax
import jax.numpy as jnp
from jax.experimental import pallas as pl
from jax.experimental.pallas import tpu as pltpu

BN_EPS = 1e-5


def _round_up(x, m):
    return (x + m - 1) // m * m


def _im2col_T(x, ksize, stride):
    """x: (N, C, H, W) -> patches^T (C*K*K, N*Ho*Wo); row order (c, kh, kw)
    matches the flattening of PyTorch Conv2d weights (C_out, C_in, Kh, Kw)."""
    N, C, H, W = x.shape
    Ho = (H - ksize) // stride + 1
    Wo = (W - ksize) // stride + 1
    cols = []
    for kh in range(ksize):
        for kw in range(ksize):
            cols.append(
                x[:, :, kh:kh + stride * Ho:stride, kw:kw + stride * Wo:stride]
            )  # (N, C, Ho, Wo)
    p = jnp.stack(cols, axis=0).reshape(ksize, ksize, N, C, Ho, Wo)
    p = p.transpose(3, 0, 1, 2, 4, 5)                   # (C, Kh, Kw, N, Ho, Wo)
    p = p.reshape(C * ksize * ksize, N * Ho * Wo)       # (Kdim, M)
    return p, Ho, Wo


@functools.partial(jax.jit, static_argnames=("stride", "tile_m"))
def conv_block_forward(x, weight, bias, gamma, beta, *, stride=3, tile_m=2048):
    """x: (N, C_in, H, W) NCHW. weight: (C_out, C_in, K, K). Returns NCHW f32."""
    # bias is accepted for API parity but unused: a per-channel constant added
    # before training-mode BatchNorm is exactly removed by the mean subtraction.
    del bias

    N, C_in, H, W = x.shape
    C_out, _, K, _ = weight.shape
    patches_T, Ho, Wo = _im2col_T(x, K, stride)         # (Kdim, M) f32
    Kdim, M = patches_T.shape

    # Lane-dense / sublane-aligned padded sizes (NO 128-lane channel padding).
    tile_m = max(128, (min(tile_m, _round_up(M, 128)) // 128) * 128)
    Mp = _round_up(M, tile_m)
    num_tiles = Mp // tile_m
    Kp = _round_up(Kdim, 16)            # bf16 sublane packing
    Cp = _round_up(C_out, 8)            # f32 sublane width

    patches_p = jnp.pad(patches_T, ((0, Kp - Kdim), (0, Mp - M))).astype(jnp.bfloat16)
    w_p = jnp.pad(weight.reshape(C_out, Kdim),
                  ((0, Cp - C_out), (0, Kp - Kdim))).astype(jnp.bfloat16)
    ss = jnp.stack([gamma.astype(jnp.float32), beta.astype(jnp.float32)], axis=1)
    ss_p = jnp.pad(ss, ((0, Cp - C_out), (0, 0)))       # (Cp, 2): [gamma | beta]

    inv_m = 1.0 / M
    n_pad_cols = Mp - M

    def kernel(p_ref, w_ref, ss_ref, o_ref, sum_ref):
        i = pl.program_id(0)

        # MXU: (Cp, Kp) x (Kp, tile_m) -> (Cp, tile_m), f32 accumulation.
        acc = jnp.dot(w_ref[...], p_ref[...], preferred_element_type=jnp.float32)
        o_ref[i] = acc                                  # grid-resident conv slab

        @pl.when(i == 0)
        def _():
            sum_ref[...] = jnp.zeros_like(sum_ref)

        sum_ref[...] += acc                             # per-channel partial sums

        # Final step: BN statistics + fused scale/shift + ReLU, all in VMEM.
        @pl.when(i == num_tiles - 1)
        def _():
            mean = jnp.sum(sum_ref[...], axis=1, keepdims=True) * inv_m    # (Cp, 1)

            # Mean-centered variance: second sweep over the resident slab
            # (avoids E[x^2]-E[x]^2 cancellation).
            def csq_body(t, carry):
                d = o_ref[t] - mean
                return carry + jnp.sum(d * d, axis=1, keepdims=True)
            csq = jax.lax.fori_loop(0, num_tiles, csq_body, jnp.zeros_like(mean))
            # Zero-padded M columns each contributed (0 - mean)^2; remove exactly.
            csq = csq - jnp.float32(n_pad_cols) * (mean * mean)
            var = jnp.maximum(csq * inv_m, 0.0)

            scale = ss_ref[:, 0:1] * jax.lax.rsqrt(var + BN_EPS)           # (Cp, 1)
            shift = ss_ref[:, 1:2] - mean * scale

            def norm_body(t, carry):
                o_ref[t] = jnp.maximum(o_ref[t] * scale + shift, 0.0)
                return carry
            jax.lax.fori_loop(0, num_tiles, norm_body, 0)

    # Explicit VMEM budget: resident conv slab (x2 buffering allowance),
    # double-buffered patches tiles, stats scratch + margin.
    slab_bytes = num_tiles * Cp * tile_m * 4
    vmem_need = 2 * slab_bytes + 2 * (Kp * tile_m * 2) + Cp * tile_m * 4 + (2 << 20)
    vmem_limit = int(min(max(vmem_need, 32 << 20), 64 << 20))

    out3d = pl.pallas_call(
        kernel,
        out_shape=jax.ShapeDtypeStruct((num_tiles, Cp, tile_m), jnp.float32),
        grid=(num_tiles,),
        in_specs=[
            pl.BlockSpec((Kp, tile_m), lambda i: (0, i)),   # patches^T tile
            pl.BlockSpec((Cp, Kp), lambda i: (0, 0)),       # weights (resident)
            pl.BlockSpec((Cp, 2), lambda i: (0, 0)),        # gamma/beta (resident)
        ],
        out_specs=pl.BlockSpec((num_tiles, Cp, tile_m), lambda i: (0, 0, 0)),
        scratch_shapes=[pltpu.VMEM((Cp, tile_m), jnp.float32)],
        compiler_params=pltpu.CompilerParams(
            dimension_semantics=("arbitrary",),
            vmem_limit_bytes=vmem_limit),
        cost_estimate=pl.CostEstimate(
            flops=2 * Mp * Kp * Cp + 8 * Mp * Cp,
            transcendentals=Cp,
            bytes_accessed=Kp * Mp * 2 + Cp * Kp * 2 + Cp * 2 * 4
                           + num_tiles * Cp * tile_m * 4),
    )(patches_p, w_p, ss_p)

    # Compact epilogue: (T, Cp, tile_m) -> (C_out, M) -> NCHW (16x less data
    # moved here than with the old 128-lane-padded layout).
    out2d = out3d.transpose(1, 0, 2).reshape(Cp, Mp)[:C_out, :M]
    return out2d.reshape(C_out, N, Ho, Wo).transpose(1, 0, 2, 3)


def _reference(x, weight, bias, gamma, beta, *, stride=3):
    """Pure-JAX reference of Conv2d + training-mode BatchNorm2d + ReLU."""
    y = jax.lax.conv_general_dilated(
        x, weight, window_strides=(stride, stride), padding="VALID",
        dimension_numbers=("NCHW", "OIHW", "NCHW"),
        precision=jax.lax.Precision.HIGHEST,
    ) + bias.reshape(1, -1, 1, 1)
    mean = jnp.mean(y, axis=(0, 2, 3), keepdims=True)
    var = jnp.mean((y - mean) ** 2, axis=(0, 2, 3), keepdims=True)
    yn = (y - mean) * jax.lax.rsqrt(var + BN_EPS)
    yn = yn * gamma.reshape(1, -1, 1, 1) + beta.reshape(1, -1, 1, 1)
    return jnp.maximum(yn, 0.0)


if __name__ == "__main__":
    # Small shapes consistent with ConvBlock(input_c=4, output_c=8, size=4, stride=3)
    N, C_in, H, W = 2, 4, 16, 16
    C_out, K, stride = 8, 4, 3

    key = jax.random.PRNGKey(0)
    kx, kw, kb, kg, kbt = jax.random.split(key, 5)
    x = jax.random.normal(kx, (N, C_in, H, W), dtype=jnp.float32)
    weight = jax.random.normal(kw, (C_out, C_in, K, K), dtype=jnp.float32) * 0.1
    bias = jax.random.normal(kb, (C_out,), dtype=jnp.float32) * 0.1
    gamma = 1.0 + 0.1 * jax.random.normal(kg, (C_out,), dtype=jnp.float32)
    beta = 0.1 * jax.random.normal(kbt, (C_out,), dtype=jnp.float32)

    out = conv_block_forward(x, weight, bias, gamma, beta, stride=stride)
    out = jax.block_until_ready(out)

    # Reference with inputs pre-rounded to bf16 so the comparison isolates the
    # kernel (both sides then do exact bf16-product / f32-accumulate math).
    x_bf = x.astype(jnp.bfloat16).astype(jnp.float32)
    w_bf = weight.astype(jnp.bfloat16).astype(jnp.float32)
    ref = _reference(x_bf, w_bf, bias, gamma, beta, stride=stride)

    Ho = (H - K) // stride + 1
    Wo = (W - K) // stride + 1
    assert out.shape == ref.shape == (N, C_out, Ho, Wo)
    assert jnp.allclose(out, ref, atol=2e-3, rtol=2e-3)

    print("KERNEL_OK")
</pallas_src>

<mosaic_0001>
module attributes {stable_mosaic.version = 11 : i64} {
  func.func @kernel(%arg0: i32, %arg1: memref<64x128xbf16, #tpu.memory_space<vmem>>, %arg2: memref<8x64xbf16, #tpu.memory_space<vmem>>, %arg3: memref<8x2xf32, #tpu.memory_space<vmem>>, %arg4: memref<1x8x128xf32, #tpu.memory_space<vmem>>, %arg5: memref<8x128xf32, #tpu.memory_space<vmem>>) attributes {dimension_semantics = [#tpu.dimension_semantics<arbitrary>], iteration_bounds = array<i64: 1>, scalar_prefetch = 0 : i64, scratch_operands = 1 : i64, tpu.core_type = #tpu.core_type<tc>, window_params = [{transform_indices = @transform_0, window_bounds = array<i64: 64, 128>}, {pipeline_mode = #tpu.pipeline_mode<synchronous>, transform_indices = @transform_1, window_bounds = array<i64: 8, 64>}, {pipeline_mode = #tpu.pipeline_mode<synchronous>, transform_indices = @transform_2, window_bounds = array<i64: 8, 2>}, {pipeline_mode = #tpu.pipeline_mode<synchronous>, transform_indices = @transform_3, window_bounds = array<i64: 1, 8, 128>}]} {
    %c0 = arith.constant 0 : index
    %c0_0 = arith.constant 0 : index
    %0 = vector.load %arg2[%c0, %c0_0] : memref<8x64xbf16, #tpu.memory_space<vmem>>, vector<8x64xbf16>
    %c0_1 = arith.constant 0 : index
    %c0_2 = arith.constant 0 : index
    %1 = vector.load %arg1[%c0_1, %c0_2] : memref<64x128xbf16, #tpu.memory_space<vmem>>, vector<64x128xbf16>
    %cst = arith.constant dense<0.000000e+00> : vector<8x128xf32>
    %2 = tpu.matmul %0, %1, %cst {dimension_numbers = #tpu.dot_dimension_numbers<[1], [0], [0], [1], [0, 0, 1, 1], [], []>} : vector<8x64xbf16>, vector<64x128xbf16>, vector<8x128xf32> -> vector<8x128xf32>
    %3 = arith.index_cast %arg0 : i32 to index
    %c0_3 = arith.constant 0 : index
    %c0_4 = arith.constant 0 : index
    %4 = vector.load %arg4[%3, %c0_3, %c0_4] : memref<1x8x128xf32, #tpu.memory_space<vmem>>, vector<1x8x128xf32>
    %5 = vector.shape_cast %4 : vector<1x8x128xf32> to vector<8x128xf32>
    %6 = vector.shape_cast %2 : vector<8x128xf32> to vector<1x8x128xf32>
    tpu.vector_store %arg4[%3, %c0_3, %c0_4], %6 {strides = array<i32>} : memref<1x8x128xf32, #tpu.memory_space<vmem>>, vector<1x8x128xf32>,
    %c0_i32 = arith.constant 0 : i32
    %7 = arith.cmpi eq, %arg0, %c0_i32 : i32
    %8 = arith.extui %7 : i1 to i32
    %c0_i32_5 = arith.constant 0 : i32
    %9 = arith.cmpi ne, %8, %c0_i32_5 : i32
    scf.if %9 {
      %cst_12 = arith.constant 0.000000e+00 : f32
      %16 = vector.broadcast %cst_12 : f32 to vector<8x128xf32>
      %c0_13 = arith.constant 0 : index
      %c0_14 = arith.constant 0 : index
      %17 = vector.load %arg5[%c0_13, %c0_14] : memref<8x128xf32, #tpu.memory_space<vmem>>, vector<8x128xf32>
      tpu.vector_store %arg5[%c0_13, %c0_14], %16 {strides = array<i32>} : memref<8x128xf32, #tpu.memory_space<vmem>>, vector<8x128xf32>,
    } else {
    }
    %c0_6 = arith.constant 0 : index
    %c0_7 = arith.constant 0 : index
    %10 = vector.load %arg5[%c0_6, %c0_7] : memref<8x128xf32, #tpu.memory_space<vmem>>, vector<8x128xf32>
    %11 = arith.addf %10, %2 : vector<8x128xf32>
    %c0_8 = arith.constant 0 : index
    %c0_9 = arith.constant 0 : index
    %12 = vector.load %arg5[%c0_8, %c0_9] : memref<8x128xf32, #tpu.memory_space<vmem>>, vector<8x128xf32>
    tpu.vector_store %arg5[%c0_8, %c0_9], %11 {strides = array<i32>} : memref<8x128xf32, #tpu.memory_space<vmem>>, vector<8x128xf32>,
    %c0_i32_10 = arith.constant 0 : i32
    %13 = arith.cmpi eq, %arg0, %c0_i32_10 : i32
    %14 = arith.extui %13 : i1 to i32
    %c0_i32_11 = arith.constant 0 : i32
    %15 = arith.cmpi ne, %14, %c0_i32_11 : i32
    scf.if %15 {
      %c0_12 = arith.constant 0 : index
      %c0_13 = arith.constant 0 : index
      %16 = vector.load %arg5[%c0_12, %c0_13] : memref<8x128xf32, #tpu.memory_space<vmem>>, vector<8x128xf32>
      %cst_14 = arith.constant dense<0.000000e+00> : vector<8xf32>
      %17 = vector.multi_reduction <add>, %16, %cst_14 [1] : vector<8x128xf32> to vector<8xf32>
      %18 = vector.shape_cast %17 : vector<8xf32> to vector<8x1xf32>
      %cst_15 = arith.constant 2.000000e-02 : f32
      %19 = vector.broadcast %cst_15 : f32 to vector<8x1xf32>
      %20 = arith.mulf %18, %19 : vector<8x1xf32>
      %cst_16 = arith.constant 0.000000e+00 : f32
      %21 = vector.broadcast %cst_16 : f32 to vector<8x1xf32>
      %c0_i32_17 = arith.constant 0 : i32
      %22 = arith.index_cast %c0_i32_17 : i32 to index
      %c0_18 = arith.constant 0 : index
      %c0_19 = arith.constant 0 : index
      %23 = vector.load %arg4[%22, %c0_18, %c0_19] : memref<1x8x128xf32, #tpu.memory_space<vmem>>, vector<1x8x128xf32>
      %24 = vector.shape_cast %23 : vector<1x8x128xf32> to vector<8x128xf32>
      %25 = vector.broadcast %20 : vector<8x1xf32> to vector<8x128xf32>
      %26 = arith.subf %24, %25 : vector<8x128xf32>
      %27 = arith.mulf %26, %26 : vector<8x128xf32>
      %cst_20 = arith.constant dense<0.000000e+00> : vector<8xf32>
      %28 = vector.multi_reduction <add>, %27, %cst_20 [1] : vector<8x128xf32> to vector<8xf32>
      %29 = vector.shape_cast %28 : vector<8xf32> to vector<8x1xf32>
      %30 = arith.addf %21, %29 : vector<8x1xf32>
      %c1_i32 = arith.constant 1 : i32
      %31 = arith.mulf %20, %20 : vector<8x1xf32>
      %cst_21 = arith.constant 7.800000e+01 : f32
      %32 = vector.broadcast %cst_21 : f32 to vector<8x1xf32>
      %33 = arith.mulf %32, %31 : vector<8x1xf32>
      %34 = arith.subf %30, %33 : vector<8x1xf32>
      %cst_22 = arith.constant 2.000000e-02 : f32
      %35 = vector.broadcast %cst_22 : f32 to vector<8x1xf32>
      %36 = arith.mulf %34, %35 : vector<8x1xf32>
      %cst_23 = arith.constant 0.000000e+00 : f32
      %37 = vector.broadcast %cst_23 : f32 to vector<8x1xf32>
      %38 = arith.maximumf %36, %37 : vector<8x1xf32>
      %c0_24 = arith.constant 0 : index
      %c0_25 = arith.constant 0 : index
      %39 = vector.load %arg3[%c0_24, %c0_25] : memref<8x2xf32, #tpu.memory_space<vmem>>, vector<8x1xf32>
      %cst_26 = arith.constant 9.99999974E-6 : f32
      %40 = vector.broadcast %cst_26 : f32 to vector<8x1xf32>
      %41 = arith.addf %38, %40 : vector<8x1xf32>
      %42 = math.rsqrt %41 : vector<8x1xf32>
      %43 = arith.mulf %39, %42 : vector<8x1xf32>
      %c0_27 = arith.constant 0 : index
      %c1 = arith.constant 1 : index
      %44 = vector.load %arg3[%c0_27, %c1] : memref<8x2xf32, #tpu.memory_space<vmem>>, vector<8x1xf32>
      %45 = arith.mulf %20, %43 : vector<8x1xf32>
      %46 = arith.subf %44, %45 : vector<8x1xf32>
      %c0_i32_28 = arith.constant 0 : i32
      %47 = arith.index_cast %c0_i32_28 : i32 to index
      %c0_29 = arith.constant 0 : index
      %c0_30 = arith.constant 0 : index
      %48 = vector.load %arg4[%47, %c0_29, %c0_30] : memref<1x8x128xf32, #tpu.memory_space<vmem>>, vector<1x8x128xf32>
      %49 = vector.shape_cast %48 : vector<1x8x128xf32> to vector<8x128xf32>
      %50 = vector.broadcast %43 : vector<8x1xf32> to vector<8x128xf32>
      %51 = arith.mulf %49, %50 : vector<8x128xf32>
      %52 = vector.broadcast %46 : vector<8x1xf32> to vector<8x128xf32>
      %53 = arith.addf %51, %52 : vector<8x128xf32>
      %cst_31 = arith.constant 0.000000e+00 : f32
      %54 = vector.broadcast %cst_31 : f32 to vector<8x128xf32>
      %55 = arith.maximumf %53, %54 : vector<8x128xf32>
      %56 = arith.index_cast %c0_i32_28 : i32 to index
      %c0_32 = arith.constant 0 : index
      %c0_33 = arith.constant 0 : index
      %57 = vector.load %arg4[%56, %c0_32, %c0_33] : memref<1x8x128xf32, #tpu.memory_space<vmem>>, vector<1x8x128xf32>
      %58 = vector.shape_cast %57 : vector<1x8x128xf32> to vector<8x128xf32>
      %59 = vector.shape_cast %55 : vector<8x128xf32> to vector<1x8x128xf32>
      tpu.vector_store %arg4[%56, %c0_32, %c0_33], %59 {strides = array<i32>} : memref<1x8x128xf32, #tpu.memory_space<vmem>>, vector<1x8x128xf32>,
      %c1_i32_34 = arith.constant 1 : i32
    } else {
    }
    return
  }
  func.func @transform_0(%arg0: i32) -> (i32, i32) {
    %c0_i32 = arith.constant 0 : i32
    %c0_i32_0 = arith.constant 0 : i32
    return %c0_i32, %arg0 : i32, i32
  }
  func.func @transform_1(%arg0: i32) -> (i32, i32) {
    %c0_i32 = arith.constant 0 : i32
    %c0_i32_0 = arith.constant 0 : i32
    %c0_i32_1 = arith.constant 0 : i32
    return %c0_i32, %c0_i32_0 : i32, i32
  }
  func.func @transform_2(%arg0: i32) -> (i32, i32) {
    %c0_i32 = arith.constant 0 : i32
    %c0_i32_0 = arith.constant 0 : i32
    %c0_i32_1 = arith.constant 0 : i32
    return %c0_i32, %c0_i32_0 : i32, i32
  }
  func.func @transform_3(%arg0: i32) -> (i32, i32, i32) {
    %c0_i32 = arith.constant 0 : i32
    %c0_i32_0 = arith.constant 0 : i32
    %c0_i32_1 = arith.constant 0 : i32
    %c0_i32_2 = arith.constant 0 : i32
    return %c0_i32, %c0_i32_0, %c0_i32_1 : i32, i32, i32
  }
}

</mosaic_0001>

<bundles_post_ra>
// kernel: conv_block_forward.1
= control target key start
LH: loop header
LB: loop body
LE: loop exit
PB: predicated region body
PF: predicated region fallthrough
CT: control target
= control target key end

     0   :  { %v184_v0 = vmov 0.0   ;;  %vm185_vm0 = vmmov 0   ;;  %vm48_vm1 = vcmask 523264   ;;  %v186_v14 = vmov 0   ;;  %s188_s22 = smov 1   ;;  %s230_s0 = inlined_call_operand.vmem [shape: bf16[64,128], index: 0, kind: input, shape index: {}]   ;;  %s231_s1 = inlined_call_operand.vmem [shape: bf16[8,64], index: 1, kind: input, shape index: {}]   ;;  %s232_s2 = inlined_call_operand.vmem [shape: f32[8,2], index: 2, kind: input, shape index: {}]   ;;  %s233_s3 = inlined_call_operand.vmem [shape: f32[1,8,128], index: 3, kind: output, shape index: {}]  }
   0x1   :  { %159 = vmatprep.subr.bf16.mxu0 %v184_v0  ;;  %v178_v1 = vld [vmem:[%s230_s0 + $0x18] sm:$0xff]   ;;  %167 = vmatprep.mubr.msk.bf16.mxu0 %vm185_vm0, %v184_v0  ;;  %v179_v2 = vld [vmem:[%s230_s0 + $0x10] sm:$0xff]   ;;  %v180_v3 = vld [vmem:[%s230_s0 + $0x8] sm:$0xff]   ;;  %v187_v22 = vmov 1  }
   0x2   :  { %160 = vmatpush3.bf16.msra.mxu0 %v178_v1  ;;  %v181_v4 = vld [vmem:[%s230_s0] sm:$0xff]   ;;  %176 = vset.pattern.permute.xlu1 %v186_v14 }
   0x3   :  { %161 = vmatprep.subr.bf16.mxu0 %v184_v0  ;;  %v15_v5 = vld [vmem:[%s231_s1] sm:$0xf]  ;;  %177 = vset.pattern.permute.xlu0 %v187_v22 }
   0x4   :  { %v121_v23 = vld [vmem:[%s232_s2] sm:$0xff] }
   0x6   :  { %162 = vmatpush3.bf16.msra.mxu0 %v179_v2 }
   0x7   :  { %163 = vmatprep.subr.bf16.mxu0 %v184_v0 }
   0xa   :  { %164 = vmatpush3.bf16.msra.mxu0 %v180_v3 }
   0xb   :  { %165 = vmatprep.subr.bf16.mxu0 %v184_v0 }
   0xe   :  { %166 = vmatpush3.bf16.msra.mxu0 %v181_v4 }
  0x11   :  { %168 = vmatmul.mubr.msk.bf16.vlgmr.msra.gmra.mxu0 %vm48_vm1, %v15_v5 }
  0xd1   :  { %v86_v6 = vpop.f32.mrf.mxu0 }
  0xd2   :  { %107 = vadd.xlane.f32.xlu0 %v86_v6 }
  0xd3   :  { %v169_v7 = vpop.f32.mrf.mxu0 }
  0xd5   :  { %v89_v8 = vpop.f32.mrf.mxu0 }
  0xd7   :  { %v170_v9 = vpop.f32.mrf.mxu0 }
 0x15b   :  { %v108_v10 = vpop.xlane.xlu0 %107 }
 0x15c   :  { %v109_v11 = vmul.f32 0.02, %v108_v10 }
 0x15e   :  { %v111_v12 = vsub.f32 %v86_v6, %v109_v11  ;;  %v116_v15 = vmul.f32 %v109_v11, %v109_v11 }
 0x160   :  { %v112_v13 = vmul.f32 %v111_v12, %v111_v12  ;;  %v117_v16 = vmul.f32 78.0, %v116_v15 }
 0x162   :  { %113 = vadd.xlane.f32.xlu0 %v112_v13 }
 0x1eb   :  { %v114_v17 = vpop.xlane.xlu0 %113 }
 0x1ec   :  { %v118_v18 = vsub.f32 %v114_v17, %v117_v16 }
 0x1ee   :  { %v119_v19 = vmul.f32 0.02, %v118_v18 }
 0x1f0   :  { %v120_v20 = vmax.f32 %v119_v19, 0.0 }
 0x1f2   :  { %v122_v21 = vadd.f32 1e-05, %v120_v20 }
 0x1f4   :  { %182 = vrsqrt.f32 %v122_v21 }
 0x201   :  { %v183_v24 = vpop.eup %182 }
 0x202   :  { %v124_v25 = vmul.f32 %v183_v24, %v121_v23 }
 0x204   :  { %v125_v26 = vmul.f32 %v124_v25, %v109_v11 }
 0x206   :  { %127 = vrot.lane.b32.xlu1 %v125_v26, %s188_s22 }
 0x20a   :  { %133 = vperm.xlu1 %176, %v124_v25  }
 0x278   :  { %v128_v27 = vpop.permute.xlu1 %127 }
 0x279   :  { %v130_v28 = vsub.f32 %v121_v23, %v128_v27 }
 0x27b   :  { %139 = vperm.xlu0 %177, %v130_v28  }
 0x285   :  { %v134_v29 = vpop.permute.xlu1 %133 }
 0x286   :  { %v136_v30 = vmul.f32 %v134_v29, %v86_v6 }
 0x2f6   :  { %v140_v31 = vpop.permute.xlu0 %139 }
 0x2f7   :  { %v142_v32 = vadd.f32 %v140_v31, %v136_v30 }
 0x2f9   :  { %v143_v33 = vmax.f32 %v142_v32, 0.0 }
 0x2fb   :  { %144 = vst [vmem:[%s233_s3] sm:$0xff] %v143_v33 }

</bundles_post_ra>
